<compile_context>
chip_gen: v6e
topology: v6e:2x2x1
jax: 0.10.0
libtpu: 0.0.40
codegen_flags: <defaults>
</compile_context>

<pallas_src>
import functools
import math

import jax
import jax.numpy as jnp
from jax import lax
from jax.experimental import pallas as pl
from jax.experimental.pallas import tpu as pltpu

D_MODEL = 32
D_QUERY = 32               # must equal D_MODEL
NUM_REPR = 6               # K
NUM_HEADS = 8
HEAD_DIM = D_MODEL // NUM_HEADS
LN_EPS = 1e-5              # PyTorch LayerNorm default
LANE = 128
LANE_PACK = LANE // D_MODEL          # 4 frames per 128-lane row
SLAB_ROWS = 8              # packed attention output slab: [B, 8, 128]
SLAB_LANES = 128
TGROUP_TILE = 2048         # frame-groups per grid step (multiple of 8) ~= 8192 frames
BB_MAX = 8                 # batches folded into one attention grid step


def _softplus(x):
    # PyTorch Softplus (beta=1, threshold=20); log1p for precision.
    return jnp.where(x > 20.0, x, jnp.log1p(jnp.exp(jnp.minimum(x, 20.0))))


# ---------------- Kernel 1a: one-shot mu/sigma estimator ---------------------------

def estimator_kernel(q_ref, w1_ref, b1_ref, g_ref, beta_ref, w2_ref, b2_ref,
                     mu_ref, sigma_ref, mu128_ref, isig128_ref):
    D = D_MODEL
    q = q_ref[...]                                                 # [B, Dq]
    # fused first layer: [Dq, 2D]  (mu half | sigma half)
    h = jnp.dot(q, w1_ref[...], preferred_element_type=jnp.float32) + b1_ref[...]

    def ln(x):
        m = jnp.mean(x, axis=-1, keepdims=True)
        v = jnp.mean((x - m) ** 2, axis=-1, keepdims=True)
        return (x - m) * lax.rsqrt(v + LN_EPS)

    hn = jnp.concatenate([ln(h[:, :D]), ln(h[:, D:])], axis=-1)
    hn = jnp.maximum(hn * g_ref[...] + beta_ref[...], 0.0)        # LN affine + ReLU
    # fused block-diagonal second layer: [2D, 2D]
    o = jnp.dot(hn, w2_ref[...], preferred_element_type=jnp.float32) + b2_ref[...]
    mu = o[:, :D]
    sigma = _softplus(o[:, D:]) + 1e-6
    isig = 1.0 / sigma
    mu_ref[...] = mu
    sigma_ref[...] = sigma
    # pre-tile to 128 lanes (matches the lane-dense [.., T/4, 128] video view)
    mu128_ref[...] = jnp.concatenate([mu] * LANE_PACK, axis=-1)
    isig128_ref[...] = jnp.concatenate([isig] * LANE_PACK, axis=-1)


def estimator_pallas(query, p):
    B, Dq = query.shape
    D = D_MODEL

    # host-side estimator fusion (constant-folds under jit)
    w1f = jnp.concatenate([p['mu_w1'], p['sg_w1']], axis=1)       # [Dq, 2D]
    b1f = jnp.concatenate([p['mu_b1'], p['sg_b1']], axis=1)       # [1, 2D]
    gf = jnp.concatenate([p['mu_g'], p['sg_g']], axis=1)
    bef = jnp.concatenate([p['mu_beta'], p['sg_beta']], axis=1)
    zero = jnp.zeros((D, D), jnp.float32)
    w2bd = jnp.concatenate(
        [jnp.concatenate([p['mu_w2'], zero], axis=1),
         jnp.concatenate([zero, p['sg_w2']], axis=1)], axis=0)    # [2D, 2D]
    b2f = jnp.concatenate([p['mu_b2'], p['sg_b2']], axis=1)

    def spec(shape):
        nd = len(shape)
        return pl.BlockSpec(tuple(shape), lambda i, _n=nd: (0,) * _n)

    return pl.pallas_call(
        estimator_kernel,
        out_shape=(jax.ShapeDtypeStruct((B, D), jnp.float32),
                   jax.ShapeDtypeStruct((B, D), jnp.float32),
                   jax.ShapeDtypeStruct((B, LANE), jnp.float32),
                   jax.ShapeDtypeStruct((B, LANE), jnp.float32)),
        grid=(1,),
        in_specs=[spec((B, Dq)), spec(w1f.shape), spec(b1f.shape),
                  spec(gf.shape), spec(bef.shape), spec(w2bd.shape), spec(b2f.shape)],
        out_specs=(spec((B, D)), spec((B, D)), spec((B, LANE)), spec((B, LANE))),
        compiler_params=pltpu.CompilerParams(dimension_semantics=("arbitrary",)),
    )(query, w1f, b1f, gf, bef, w2bd, b2f)


# ---------------- Kernel 1b: lane-dense Mahalanobis distance streamer --------------

def dist_kernel(vr_ref, mu_ref, isig_ref, sel_ref, dist_ref):
    c = vr_ref[0] - mu_ref[0]                                     # [TGT, 128]
    sq = c * c * isig_ref[0]
    # per-frame reduction: 32-lane segmented sum via [128, 4] block-selector matmul
    dist_ref[0] = jnp.dot(sq, sel_ref[...], preferred_element_type=jnp.float32)


def distances_pallas(video, mu128, isig128):
    B, T, D = video.shape
    LP = LANE_PACK
    tg_total = pl.cdiv(T, LP)
    t_pad = tg_total * LP
    if t_pad != T:
        video = jnp.pad(video, ((0, 0), (0, t_pad - T), (0, 0)))
    vr = video.reshape(B, tg_total, LANE)                         # free contiguous view
    tgt = tg_total if tg_total <= TGROUP_TILE else TGROUP_TILE

    mu3 = mu128.reshape(B, 1, LANE)
    is3 = isig128.reshape(B, 1, LANE)
    sel = (jnp.arange(LANE)[:, None] // D ==
           jnp.arange(LP)[None, :]).astype(jnp.float32)           # [128, 4]

    dist4 = pl.pallas_call(
        dist_kernel,
        out_shape=jax.ShapeDtypeStruct((B, tg_total, LP), jnp.float32),
        grid=(B, pl.cdiv(tg_total, tgt)),
        in_specs=[
            pl.BlockSpec((1, tgt, LANE), lambda b, t: (b, t, 0)),
            pl.BlockSpec((1, 1, LANE), lambda b, t: (b, 0, 0)),
            pl.BlockSpec((1, 1, LANE), lambda b, t: (b, 0, 0)),
            pl.BlockSpec((LANE, LP), lambda b, t: (0, 0)),
        ],
        out_specs=pl.BlockSpec((1, tgt, LP), lambda b, t: (b, t, 0)),
        compiler_params=pltpu.CompilerParams(
            dimension_semantics=("parallel", "parallel")),
    )(vr, mu3, is3, sel)
    return dist4.reshape(B, t_pad)[:, :T]


# ---------------- Kernel 2: refiner self-attn + cross-attn + LayerNorm --------------

def attn_kernel(qe_ref, rep_ref,
                swqkv_ref, sbqkv_ref, swo_ref, sbo_ref,
                cwqkv_ref, cbqkv_ref, cwo_ref, cbo_ref,
                ng_ref, nb_ref,
                hmask_ref, ssum_ref, sexp_ref, savg_ref,
                out_ref, *, bb_n):
    D, K, H = D_MODEL, NUM_REPR, NUM_HEADS
    scale = 1.0 / math.sqrt(HEAD_DIM)

    # hoisted host-built constants (VMEM-resident, no per-step iota/compare work)
    head_mask = hmask_ref[...]                                    # [HK, D]
    seg_sum = ssum_ref[...]                                       # [HK, H]
    seg_exp = sexp_ref[...]                                       # [H, HK]
    avg_mat = savg_ref[...]                                       # [HK, K]
    swqkv = swqkv_ref[...]; sbqkv = sbqkv_ref[...]
    swo = swo_ref[...]; sbo = sbo_ref[...]
    cwqkv = cwqkv_ref[...]; cbqkv = cbqkv_ref[...]
    cwo = cwo_ref[...]; cbo = cbo_ref[...]
    ng = ng_ref[...]; nb = nb_ref[...]

    # zero-padding slabs hoisted out of the BB loop (no repeated broadcast_in_dim)
    zpad_k = jnp.zeros((K, SLAB_LANES - D - K), jnp.float32)
    zpad_1 = jnp.zeros((1, SLAB_LANES - D - K), jnp.float32)
    zpad_tail = (jnp.zeros((SLAB_ROWS - K - 1, SLAB_LANES), jnp.float32)
                 if SLAB_ROWS - K - 1 > 0 else None)

    def mha(q, k, v, wo, bo):
        # q: [Lq, D]; k, v: [K, D].  All heads in ONE score matmul.
        k_bd = jnp.tile(k, (H, 1)) * head_mask                    # [HK, D]
        v_bd = jnp.tile(v, (H, 1)) * head_mask                    # [HK, D]
        # contract last dims -> no explicit transpose of k
        s = lax.dot_general(q, k_bd, (((1,), (1,)), ((), ())),
                            preferred_element_type=jnp.float32) * scale      # [Lq, HK]
        # global row max is a valid per-head stabilizer (softmax shift invariance)
        p = jnp.exp(s - jnp.max(s, axis=-1, keepdims=True))
        denom = jnp.dot(p, seg_sum, preferred_element_type=jnp.float32)       # [Lq, H]
        prob = p * jnp.dot(1.0 / denom, seg_exp,
                           preferred_element_type=jnp.float32)                # [Lq, HK]
        out = jnp.dot(prob, v_bd, preferred_element_type=jnp.float32)         # [Lq, D]
        out = jnp.dot(out, wo, preferred_element_type=jnp.float32) + bo
        w_avg = jnp.dot(prob, avg_mat, preferred_element_type=jnp.float32)    # [Lq, K]
        return out, w_avg

    # unrolled loop over the BB sub-batches in this grid step (amortizes the
    # per-step overhead; all sub-batches are independent so the scheduler can
    # interleave their tiny matmuls)
    for bb in range(bb_n):
        rep = rep_ref[bb]                                         # [K, D]
        qe = qe_ref[bb]                                           # [1, D]

        # refiner: self-attention over the K representatives (fused QKV matmul)
        qkv_s = jnp.dot(rep, swqkv, preferred_element_type=jnp.float32) + sbqkv
        refined, self_w = mha(qkv_s[:, :D], qkv_s[:, D:2 * D], qkv_s[:, 2 * D:],
                              swo, sbo)

        # cross-attention (query vs refined reps): fused QKV on [qe; refined]
        xcat = jnp.concatenate([qe, refined], axis=0)             # [1+K, D]
        qkv_c = jnp.dot(xcat, cwqkv, preferred_element_type=jnp.float32) + cbqkv
        att, cross_w = mha(qkv_c[0:1, :D], qkv_c[1:, D:2 * D], qkv_c[1:, 2 * D:],
                           cwo, cbo)

        y = att + qe                                              # residual
        m = jnp.mean(y, axis=-1, keepdims=True)
        var = jnp.mean((y - m) ** 2, axis=-1, keepdims=True)
        attended = (y - m) * lax.rsqrt(var + LN_EPS) * ng + nb

        # pack the four tiny outputs into one lane-dense [8, 128] slab row-block
        top = jnp.concatenate([refined, self_w, zpad_k], axis=-1)
        mid = jnp.concatenate([attended, cross_w, zpad_1], axis=-1)
        parts = [top, mid]
        if zpad_tail is not None:
            parts.append(zpad_tail)
        out_ref[bb] = jnp.concatenate(parts, axis=0)


def attn_pallas(query, video, indices, p):
    B, T, D = video.shape
    K = NUM_REPR

    # representative-frame gather in the wrapper (B*K*D*4 bytes); the auto
    # pipeline then prefetches each grid step's reps for free.
    reps = jnp.take_along_axis(video, indices[:, :, None], axis=1)   # [B, K, D]
    qe3 = query[:, None, :]                                          # [B, 1, D]

    bb_n = B if B <= BB_MAX else BB_MAX
    n_steps = pl.cdiv(B, bb_n)
    b_pad = n_steps * bb_n
    if b_pad != B:
        qe3 = jnp.pad(qe3, ((0, b_pad - B), (0, 0), (0, 0)))
        reps = jnp.pad(reps, ((0, b_pad - B), (0, 0), (0, 0)))

    # host-side weight fusion: (Wq|Wk|Wv) -> [D, 3D], biases -> [1, 3D]
    s_wqkv = jnp.concatenate([p['s_wq'], p['s_wk'], p['s_wv']], axis=1)
    s_bqkv = jnp.concatenate([p['s_bq'], p['s_bk'], p['s_bv']], axis=1)
    c_wqkv = jnp.concatenate([p['c_wq'], p['c_wk'], p['c_wv']], axis=1)
    c_bqkv = jnp.concatenate([p['c_bq'], p['c_bk'], p['c_bv']], axis=1)

    # host-built 0/1 head-packing constants (previously rebuilt every grid step)
    HK = NUM_HEADS * K
    rows = jnp.arange(HK)[:, None]
    lo = (jnp.arange(D) // HEAD_DIM)[None, :] * K
    head_mask = ((rows >= lo) & (rows < lo + K)).astype(jnp.float32)      # [HK, D]
    hcol = jnp.arange(NUM_HEADS)[None, :] * K
    seg_sum = ((rows >= hcol) & (rows < hcol + K)).astype(jnp.float32)    # [HK, H]
    seg_exp = seg_sum.T                                                   # [H, HK]
    avg_mat = jnp.tile(jnp.eye(K, dtype=jnp.float32),
                       (NUM_HEADS, 1)) * (1.0 / NUM_HEADS)                # [HK, K]

    def cspec(shape):
        nd = len(shape)
        return pl.BlockSpec(tuple(shape), lambda g, _n=nd: (0,) * _n)

    in_specs = [
        pl.BlockSpec((bb_n, 1, D), lambda g: (g, 0, 0)),          # query rows
        pl.BlockSpec((bb_n, K, D), lambda g: (g, 0, 0)),          # gathered reps
        cspec(s_wqkv.shape), cspec(s_bqkv.shape),
        cspec(p['s_wo'].shape), cspec(p['s_bo'].shape),
        cspec(c_wqkv.shape), cspec(c_bqkv.shape),
        cspec(p['c_wo'].shape), cspec(p['c_bo'].shape),
        cspec(p['ln_g'].shape), cspec(p['ln_b'].shape),
        cspec(head_mask.shape), cspec(seg_sum.shape),
        cspec(seg_exp.shape), cspec(avg_mat.shape),
    ]
    slab = pl.pallas_call(
        functools.partial(attn_kernel, bb_n=bb_n),
        out_shape=jax.ShapeDtypeStruct((b_pad, SLAB_ROWS, SLAB_LANES), jnp.float32),
        grid=(n_steps,),
        in_specs=in_specs,
        out_specs=pl.BlockSpec((bb_n, SLAB_ROWS, SLAB_LANES), lambda g: (g, 0, 0)),
        compiler_params=pltpu.CompilerParams(dimension_semantics=("parallel",)),
    )(qe3, reps, s_wqkv, s_bqkv, p['s_wo'], p['s_bo'],
      c_wqkv, c_bqkv, p['c_wo'], p['c_bo'], p['ln_g'], p['ln_b'],
      head_mask, seg_sum, seg_exp, avg_mat)

    refined = slab[:B, :K, :D]
    self_w = slab[:B, :K, D:D + K]
    attended = slab[:B, K:K + 1, :D]
    cross_w = slab[:B, K:K + 1, D:D + K]
    return refined, self_w, attended, cross_w


# ---------------- NTLBG selection (plain JAX; data-dependent control flow) ----------

def ntlbg_selection(distances, K):
    B, T = distances.shape
    if T <= K:
        idx = jnp.concatenate([jnp.arange(T, dtype=jnp.int32),
                               jnp.zeros((K - T,), jnp.int32)])
        return jnp.broadcast_to(idx, (B, K))
    C = min(3 * K, T)

    def per_batch(dist):
        srt = jnp.sort(dist)
        target = srt[(T - 1) // 2]          # torch.median: lower middle for even T
        dtt = jnp.abs(dist - target)
        # jnp.argsort is stable; torch.topk tie-order may differ on exact ties.
        cands = jnp.argsort(dtt)[:C].astype(jnp.int32)
        selected = jnp.zeros((K,), jnp.int32).at[0].set(cands[0])
        remaining = jnp.ones((C,), jnp.bool_).at[0].set(False)
        for step in range(1, K):            # greedy temporal max-min diversification
            d = jnp.min(jnp.abs(cands[:, None] - selected[None, :step]), axis=1)
            d = jnp.where(remaining, d, -1)
            best = jnp.argmax(d)
            selected = selected.at[step].set(cands[best])
            remaining = remaining.at[best].set(False)
        return selected

    return jax.vmap(per_batch)(distances)


# ---------------- Parameters & full forward -----------------------------------------

def init_params(key):
    d, dq = D_MODEL, D_QUERY
    ks = iter(jax.random.split(key, 24))

    def w(shape):
        return jax.random.normal(next(ks), shape, jnp.float32) * 0.02

    p = {
        'mu_w1': w((dq, d)), 'mu_b1': w((1, d)),
        'mu_g': jnp.ones((1, d), jnp.float32), 'mu_beta': jnp.zeros((1, d), jnp.float32),
        'mu_w2': w((d, d)), 'mu_b2': w((1, d)),
        'sg_w1': w((dq, d)), 'sg_b1': w((1, d)),
        'sg_g': jnp.ones((1, d), jnp.float32), 'sg_beta': jnp.zeros((1, d), jnp.float32),
        'sg_w2': w((d, d)), 'sg_b2': w((1, d)),
        's_wq': w((d, d)), 's_wk': w((d, d)), 's_wv': w((d, d)),
        's_bq': jnp.zeros((1, d), jnp.float32), 's_bk': jnp.zeros((1, d), jnp.float32),
        's_bv': jnp.zeros((1, d), jnp.float32),
        's_wo': w((d, d)), 's_bo': jnp.zeros((1, d), jnp.float32),
        'c_wq': w((d, d)), 'c_wk': w((d, d)), 'c_wv': w((d, d)),
        'c_bq': jnp.zeros((1, d), jnp.float32), 'c_bk': jnp.zeros((1, d), jnp.float32),
        'c_bv': jnp.zeros((1, d), jnp.float32),
        'c_wo': w((d, d)), 'c_bo': jnp.zeros((1, d), jnp.float32),
        'ln_g': jnp.ones((1, d), jnp.float32), 'ln_b': jnp.zeros((1, d), jnp.float32),
    }
    # NOTE: the PyTorch module also defines `temporal_weight`, never used in forward().
    return p


def ntlbg_attention_forward(video_features, query_embedding, params):
    B, T, D = video_features.shape
    assert D == D_MODEL, "video feature dim must equal d_model"
    assert query_embedding.shape[1] == D_MODEL, \
        "d_query must equal d_model (required by the module's cross_attention)"
    K = NUM_REPR

    mu_q, sigma_q, mu128, isig128 = estimator_pallas(query_embedding, params)
    dists = distances_pallas(video_features, mu128, isig128)
    indices = ntlbg_selection(dists, K).astype(jnp.int32)                   # [B, K]
    refined, self_w, attended, cross_w = attn_pallas(
        query_embedding, video_features, indices, params)

    return {
        'representative_features': refined,          # [B, K, D]
        'representative_indices': indices,           # [B, K]
        'mahalanobis_distances': dists,              # [B, T]
        'mu_q': mu_q,                                # [B, D]
        'sigma_q': sigma_q,                          # [B, D]
        'attention_weights': self_w,                 # [B, K, K]
        'attended_features': attended,               # [B, 1, D]
        'cross_attention_weights': cross_w,          # [B, 1, K]
    }


if __name__ == "__main__":
    key = jax.random.PRNGKey(0)
    kp, kv, kq = jax.random.split(key, 3)
    params = init_params(kp)

    B, T = 2, 8
    video = jax.random.normal(kv, (B, T, D_MODEL), jnp.float32)
    query = jax.random.normal(kq, (B, D_QUERY), jnp.float32)

    out = ntlbg_attention_forward(video, query, params)
    jax.block_until_ready(out)
    print("KERNEL_OK")
</pallas_src>

<mosaic_0001>
module attributes {stable_mosaic.version = 11 : i64} {
  func.func @estimator_kernel(%arg0: i32, %arg1: memref<2x32xf32, #tpu.memory_space<vmem>>, %arg2: memref<32x64xf32, #tpu.memory_space<vmem>>, %arg3: memref<1x64xf32, #tpu.memory_space<vmem>>, %arg4: memref<1x64xf32, #tpu.memory_space<vmem>>, %arg5: memref<1x64xf32, #tpu.memory_space<vmem>>, %arg6: memref<64x64xf32, #tpu.memory_space<vmem>>, %arg7: memref<1x64xf32, #tpu.memory_space<vmem>>, %arg8: memref<2x32xf32, #tpu.memory_space<vmem>>, %arg9: memref<2x32xf32, #tpu.memory_space<vmem>>, %arg10: memref<2x128xf32, #tpu.memory_space<vmem>>, %arg11: memref<2x128xf32, #tpu.memory_space<vmem>>) attributes {dimension_semantics = [#tpu.dimension_semantics<arbitrary>], iteration_bounds = array<i64: 1>, scalar_prefetch = 0 : i64, scratch_operands = 0 : i64, tpu.core_type = #tpu.core_type<tc>, window_params = [{pipeline_mode = #tpu.pipeline_mode<synchronous>, transform_indices = @transform_0, window_bounds = array<i64: 2, 32>}, {pipeline_mode = #tpu.pipeline_mode<synchronous>, transform_indices = @transform_1, window_bounds = array<i64: 32, 64>}, {pipeline_mode = #tpu.pipeline_mode<synchronous>, transform_indices = @transform_2, window_bounds = array<i64: 1, 64>}, {pipeline_mode = #tpu.pipeline_mode<synchronous>, transform_indices = @transform_3, window_bounds = array<i64: 1, 64>}, {pipeline_mode = #tpu.pipeline_mode<synchronous>, transform_indices = @transform_4, window_bounds = array<i64: 1, 64>}, {pipeline_mode = #tpu.pipeline_mode<synchronous>, transform_indices = @transform_5, window_bounds = array<i64: 64, 64>}, {pipeline_mode = #tpu.pipeline_mode<synchronous>, transform_indices = @transform_6, window_bounds = array<i64: 1, 64>}, {pipeline_mode = #tpu.pipeline_mode<synchronous>, transform_indices = @transform_7, window_bounds = array<i64: 2, 32>}, {pipeline_mode = #tpu.pipeline_mode<synchronous>, transform_indices = @transform_8, window_bounds = array<i64: 2, 32>}, {pipeline_mode = #tpu.pipeline_mode<synchronous>, transform_indices = @transform_9, window_bounds = array<i64: 2, 128>}, {pipeline_mode = #tpu.pipeline_mode<synchronous>, transform_indices = @transform_10, window_bounds = array<i64: 2, 128>}]} {
    %c0 = arith.constant 0 : index
    %c0_0 = arith.constant 0 : index
    %0 = vector.load %arg1[%c0, %c0_0] : memref<2x32xf32, #tpu.memory_space<vmem>>, vector<2x32xf32>
    %c0_1 = arith.constant 0 : index
    %c0_2 = arith.constant 0 : index
    %1 = vector.load %arg2[%c0_1, %c0_2] : memref<32x64xf32, #tpu.memory_space<vmem>>, vector<32x64xf32>
    %cst = arith.constant dense<0.000000e+00> : vector<2x64xf32>
    %2 = tpu.matmul %0, %1, %cst {dimension_numbers = #tpu.dot_dimension_numbers<[1], [0], [0], [1], [0, 0, 1, 1], [], []>} : vector<2x32xf32>, vector<32x64xf32>, vector<2x64xf32> -> vector<2x64xf32>
    %c0_3 = arith.constant 0 : index
    %c0_4 = arith.constant 0 : index
    %3 = vector.load %arg3[%c0_3, %c0_4] : memref<1x64xf32, #tpu.memory_space<vmem>>, vector<1x64xf32>
    %4 = vector.broadcast %3 : vector<1x64xf32> to vector<2x64xf32>
    %5 = arith.addf %2, %4 : vector<2x64xf32>
    %6 = vector.extract_strided_slice %5 {offsets = [0, 0], sizes = [2, 32], strides = [1, 1]} : vector<2x64xf32> to vector<2x32xf32>
    %cst_5 = arith.constant dense<0.000000e+00> : vector<2xf32>
    %7 = vector.multi_reduction <add>, %6, %cst_5 [1] : vector<2x32xf32> to vector<2xf32>
    %8 = vector.shape_cast %7 : vector<2xf32> to vector<2x1xf32>
    %cst_6 = arith.constant 3.200000e+01 : f32
    %9 = vector.broadcast %cst_6 : f32 to vector<2x1xf32>
    %10 = arith.divf %8, %9 : vector<2x1xf32>
    %11 = vector.broadcast %10 : vector<2x1xf32> to vector<2x32xf32>
    %12 = arith.subf %6, %11 : vector<2x32xf32>
    %13 = arith.mulf %12, %12 : vector<2x32xf32>
    %cst_7 = arith.constant dense<0.000000e+00> : vector<2xf32>
    %14 = vector.multi_reduction <add>, %13, %cst_7 [1] : vector<2x32xf32> to vector<2xf32>
    %15 = vector.shape_cast %14 : vector<2xf32> to vector<2x1xf32>
    %cst_8 = arith.constant 3.200000e+01 : f32
    %16 = vector.broadcast %cst_8 : f32 to vector<2x1xf32>
    %17 = arith.divf %15, %16 : vector<2x1xf32>
    %18 = vector.broadcast %10 : vector<2x1xf32> to vector<2x32xf32>
    %19 = arith.subf %6, %18 : vector<2x32xf32>
    %cst_9 = arith.constant 9.99999974E-6 : f32
    %20 = vector.broadcast %cst_9 : f32 to vector<2x1xf32>
    %21 = arith.addf %17, %20 : vector<2x1xf32>
    %22 = math.rsqrt %21 : vector<2x1xf32>
    %23 = vector.broadcast %22 : vector<2x1xf32> to vector<2x32xf32>
    %24 = arith.mulf %19, %23 : vector<2x32xf32>
    %25 = vector.extract_strided_slice %5 {offsets = [0, 32], sizes = [2, 32], strides = [1, 1]} : vector<2x64xf32> to vector<2x32xf32>
    %cst_10 = arith.constant dense<0.000000e+00> : vector<2xf32>
    %26 = vector.multi_reduction <add>, %25, %cst_10 [1] : vector<2x32xf32> to vector<2xf32>
    %27 = vector.shape_cast %26 : vector<2xf32> to vector<2x1xf32>
    %cst_11 = arith.constant 3.200000e+01 : f32
    %28 = vector.broadcast %cst_11 : f32 to vector<2x1xf32>
    %29 = arith.divf %27, %28 : vector<2x1xf32>
    %30 = vector.broadcast %29 : vector<2x1xf32> to vector<2x32xf32>
    %31 = arith.subf %25, %30 : vector<2x32xf32>
    %32 = arith.mulf %31, %31 : vector<2x32xf32>
    %cst_12 = arith.constant dense<0.000000e+00> : vector<2xf32>
    %33 = vector.multi_reduction <add>, %32, %cst_12 [1] : vector<2x32xf32> to vector<2xf32>
    %34 = vector.shape_cast %33 : vector<2xf32> to vector<2x1xf32>
    %cst_13 = arith.constant 3.200000e+01 : f32
    %35 = vector.broadcast %cst_13 : f32 to vector<2x1xf32>
    %36 = arith.divf %34, %35 : vector<2x1xf32>
    %37 = vector.broadcast %29 : vector<2x1xf32> to vector<2x32xf32>
    %38 = arith.subf %25, %37 : vector<2x32xf32>
    %cst_14 = arith.constant 9.99999974E-6 : f32
    %39 = vector.broadcast %cst_14 : f32 to vector<2x1xf32>
    %40 = arith.addf %36, %39 : vector<2x1xf32>
    %41 = math.rsqrt %40 : vector<2x1xf32>
    %42 = vector.broadcast %41 : vector<2x1xf32> to vector<2x32xf32>
    %43 = arith.mulf %38, %42 : vector<2x32xf32>
    %44 = tpu.concatenate %24, %43 in 1 : vector<2x32xf32>, vector<2x32xf32> -> vector<2x64xf32>
    %c0_15 = arith.constant 0 : index
    %c0_16 = arith.constant 0 : index
    %45 = vector.load %arg4[%c0_15, %c0_16] : memref<1x64xf32, #tpu.memory_space<vmem>>, vector<1x64xf32>
    %46 = vector.broadcast %45 : vector<1x64xf32> to vector<2x64xf32>
    %47 = arith.mulf %44, %46 : vector<2x64xf32>
    %c0_17 = arith.constant 0 : index
    %c0_18 = arith.constant 0 : index
    %48 = vector.load %arg5[%c0_17, %c0_18] : memref<1x64xf32, #tpu.memory_space<vmem>>, vector<1x64xf32>
    %49 = vector.broadcast %48 : vector<1x64xf32> to vector<2x64xf32>
    %50 = arith.addf %47, %49 : vector<2x64xf32>
    %cst_19 = arith.constant 0.000000e+00 : f32
    %51 = vector.broadcast %cst_19 : f32 to vector<2x64xf32>
    %52 = arith.maximumf %50, %51 : vector<2x64xf32>
    %c0_20 = arith.constant 0 : index
    %c0_21 = arith.constant 0 : index
    %53 = vector.load %arg6[%c0_20, %c0_21] : memref<64x64xf32, #tpu.memory_space<vmem>>, vector<64x64xf32>
    %cst_22 = arith.constant dense<0.000000e+00> : vector<2x64xf32>
    %54 = tpu.matmul %52, %53, %cst_22 {dimension_numbers = #tpu.dot_dimension_numbers<[1], [0], [0], [1], [0, 0, 1, 1], [], []>} : vector<2x64xf32>, vector<64x64xf32>, vector<2x64xf32> -> vector<2x64xf32>
    %c0_23 = arith.constant 0 : index
    %c0_24 = arith.constant 0 : index
    %55 = vector.load %arg7[%c0_23, %c0_24] : memref<1x64xf32, #tpu.memory_space<vmem>>, vector<1x64xf32>
    %56 = vector.broadcast %55 : vector<1x64xf32> to vector<2x64xf32>
    %57 = arith.addf %54, %56 : vector<2x64xf32>
    %58 = vector.extract_strided_slice %57 {offsets = [0, 0], sizes = [2, 32], strides = [1, 1]} : vector<2x64xf32> to vector<2x32xf32>
    %59 = vector.extract_strided_slice %57 {offsets = [0, 32], sizes = [2, 32], strides = [1, 1]} : vector<2x64xf32> to vector<2x32xf32>
    %cst_25 = arith.constant 2.000000e+01 : f32
    %60 = vector.broadcast %cst_25 : f32 to vector<2x32xf32>
    %61 = arith.cmpf ogt, %59, %60 : vector<2x32xf32>
    %cst_26 = arith.constant 2.000000e+01 : f32
    %62 = vector.broadcast %cst_26 : f32 to vector<2x32xf32>
    %63 = arith.minimumf %59, %62 : vector<2x32xf32>
    %64 = math.exp %63 : vector<2x32xf32>
    %65 = math.log1p %64 : vector<2x32xf32>
    %66 = arith.select %61, %59, %65 : vector<2x32xi1>, vector<2x32xf32>
    %cst_27 = arith.constant 9.99999997E-7 : f32
    %67 = vector.broadcast %cst_27 : f32 to vector<2x32xf32>
    %68 = arith.addf %66, %67 : vector<2x32xf32>
    %cst_28 = arith.constant 1.000000e+00 : f32
    %69 = vector.broadcast %cst_28 : f32 to vector<2x32xf32>
    %70 = arith.divf %69, %68 : vector<2x32xf32>
    %c0_29 = arith.constant 0 : index
    %c0_30 = arith.constant 0 : index
    %71 = vector.load %arg8[%c0_29, %c0_30] : memref<2x32xf32, #tpu.memory_space<vmem>>, vector<2x32xf32>
    tpu.vector_store %arg8[%c0_29, %c0_30], %58 {strides = array<i32>} : memref<2x32xf32, #tpu.memory_space<vmem>>, vector<2x32xf32>,
    %c0_31 = arith.constant 0 : index
    %c0_32 = arith.constant 0 : index
    %72 = vector.load %arg9[%c0_31, %c0_32] : memref<2x32xf32, #tpu.memory_space<vmem>>, vector<2x32xf32>
    tpu.vector_store %arg9[%c0_31, %c0_32], %68 {strides = array<i32>} : memref<2x32xf32, #tpu.memory_space<vmem>>, vector<2x32xf32>,
    %73 = tpu.concatenate %58, %58, %58, %58 in 1 : vector<2x32xf32>, vector<2x32xf32>, vector<2x32xf32>, vector<2x32xf32> -> vector<2x128xf32>
    %c0_33 = arith.constant 0 : index
    %c0_34 = arith.constant 0 : index
    %74 = vector.load %arg10[%c0_33, %c0_34] : memref<2x128xf32, #tpu.memory_space<vmem>>, vector<2x128xf32>
    tpu.vector_store %arg10[%c0_33, %c0_34], %73 {strides = array<i32>} : memref<2x128xf32, #tpu.memory_space<vmem>>, vector<2x128xf32>,
    %75 = tpu.concatenate %70, %70, %70, %70 in 1 : vector<2x32xf32>, vector<2x32xf32>, vector<2x32xf32>, vector<2x32xf32> -> vector<2x128xf32>
    %c0_35 = arith.constant 0 : index
    %c0_36 = arith.constant 0 : index
    %76 = vector.load %arg11[%c0_35, %c0_36] : memref<2x128xf32, #tpu.memory_space<vmem>>, vector<2x128xf32>
    tpu.vector_store %arg11[%c0_35, %c0_36], %75 {strides = array<i32>} : memref<2x128xf32, #tpu.memory_space<vmem>>, vector<2x128xf32>,
    return
  }
  func.func @transform_0(%arg0: i32) -> (i32, i32) {
    %c0_i32 = arith.constant 0 : i32
    %c0_i32_0 = arith.constant 0 : i32
    %c0_i32_1 = arith.constant 0 : i32
    return %c0_i32, %c0_i32_0 : i32, i32
  }
  func.func @transform_1(%arg0: i32) -> (i32, i32) {
    %c0_i32 = arith.constant 0 : i32
    %c0_i32_0 = arith.constant 0 : i32
    %c0_i32_1 = arith.constant 0 : i32
    return %c0_i32, %c0_i32_0 : i32, i32
  }
  func.func @transform_2(%arg0: i32) -> (i32, i32) {
    %c0_i32 = arith.constant 0 : i32
    %c0_i32_0 = arith.constant 0 : i32
    %c0_i32_1 = arith.constant 0 : i32
    return %c0_i32, %c0_i32_0 : i32, i32
  }
  func.func @transform_3(%arg0: i32) -> (i32, i32) {
    %c0_i32 = arith.constant 0 : i32
    %c0_i32_0 = arith.constant 0 : i32
    %c0_i32_1 = arith.constant 0 : i32
    return %c0_i32, %c0_i32_0 : i32, i32
  }
  func.func @transform_4(%arg0: i32) -> (i32, i32) {
    %c0_i32 = arith.constant 0 : i32
    %c0_i32_0 = arith.constant 0 : i32
    %c0_i32_1 = arith.constant 0 : i32
    return %c0_i32, %c0_i32_0 : i32, i32
  }
  func.func @transform_5(%arg0: i32) -> (i32, i32) {
    %c0_i32 = arith.constant 0 : i32
    %c0_i32_0 = arith.constant 0 : i32
    %c0_i32_1 = arith.constant 0 : i32
    return %c0_i32, %c0_i32_0 : i32, i32
  }
  func.func @transform_6(%arg0: i32) -> (i32, i32) {
    %c0_i32 = arith.constant 0 : i32
    %c0_i32_0 = arith.constant 0 : i32
    %c0_i32_1 = arith.constant 0 : i32
    return %c0_i32, %c0_i32_0 : i32, i32
  }
  func.func @transform_7(%arg0: i32) -> (i32, i32) {
    %c0_i32 = arith.constant 0 : i32
    %c0_i32_0 = arith.constant 0 : i32
    %c0_i32_1 = arith.constant 0 : i32
    return %c0_i32, %c0_i32_0 : i32, i32
  }
  func.func @transform_8(%arg0: i32) -> (i32, i32) {
    %c0_i32 = arith.constant 0 : i32
    %c0_i32_0 = arith.constant 0 : i32
    %c0_i32_1 = arith.constant 0 : i32
    return %c0_i32, %c0_i32_0 : i32, i32
  }
  func.func @transform_9(%arg0: i32) -> (i32, i32) {
    %c0_i32 = arith.constant 0 : i32
    %c0_i32_0 = arith.constant 0 : i32
    %c0_i32_1 = arith.constant 0 : i32
    return %c0_i32, %c0_i32_0 : i32, i32
  }
  func.func @transform_10(%arg0: i32) -> (i32, i32) {
    %c0_i32 = arith.constant 0 : i32
    %c0_i32_0 = arith.constant 0 : i32
    %c0_i32_1 = arith.constant 0 : i32
    return %c0_i32, %c0_i32_0 : i32, i32
  }
}

</mosaic_0001>

<bundles_post_ra>
// kernel: tpu_custom_call.1
= control target key start
LH: loop header
LB: loop body
LE: loop exit
PB: predicated region body
PF: predicated region fallthrough
CT: control target
= control target key end

     0   :  { %16 = vsyncpa [#allocation3], 0  ;;  %s782_s0 = inlined_call_operand.hbm [shape: f32[2,32], index: 0, kind: input, shape index: {}]   ;;  %s783_s1 = inlined_call_operand.hbm [shape: f32[32,64], index: 1, kind: input, shape index: {}]   ;;  %s784_s2 = inlined_call_operand.vmem [shape: f32[1,64], index: 2, kind: input, shape index: {}]   ;;  %s785_s3 = inlined_call_operand.vmem [shape: f32[1,64], index: 3, kind: input, shape index: {}]   ;;  %s786_s4 = inlined_call_operand.vmem [shape: f32[1,64], index: 4, kind: input, shape index: {}]   ;;  %s787_s5 = inlined_call_operand.hbm [shape: f32[64,64], index: 5, kind: input, shape index: {}]   ;;  %s788_s6 = inlined_call_operand.vmem [shape: f32[1,64], index: 6, kind: input, shape index: {}]   ;;  %s789_s7 = inlined_call_operand.hbm [shape: f32[2,32], index: 7, kind: output, shape index: {0}]   ;;  %s790_s8 = inlined_call_operand.hbm [shape: f32[2,32], index: 8, kind: output, shape index: {1}]   ;;  %s791_s9 = inlined_call_operand.hbm [shape: f32[2,128], index: 9, kind: output, shape index: {2}]   ;;  %s792_s10 = inlined_call_operand.hbm [shape: f32[2,128], index: 10, kind: output, shape index: {3}]  }
   0x1   :  { %17 = vsyncpa [#allocation6], 0 }
   0x2   :  { %18 = vsyncpa [#allocation4], 0 }
   0x3   :  { %19 = vsyncpa [#allocation10], 0 }
   0x4   :  { %20 = vsyncpa [#allocation13], 0  ;;  %s634_s13 = smov [#allocation5]  }
   0x5   :  { %s36_s14 = sshll.u32 %s634_s13, 4  ;;  %s37_s14 = int_to_ptr.vmem [resolvable:$true] %s36_s14 }
   0x6   :  { %s492_s15 = scalar_lea.vmem %s37_s14, 512  ;;  %p497_p1 = scmp.lt.s32.totalorder %s37_s14, %s37_s14 }
   0x7   :  { %p493_p0 = scmp.ne.s32.totalorder %s37_s14, %s492_s15  ;;  %p498_p2 = scmp.lt.s32.totalorder %s492_s15, %s492_s15 }
   0x9   :  { %p499_p3 = por %p498_p2, %p497_p1 }
   0xb   :  { %p500_p4 = pnand %p499_p3, %p493_p0 }
   0xd   :  { %503 = shalt.err (!%p500_p4)
}
   0xe   :  { %s635_s16 = smov 128   ;;  %s636_s17 = smov 8  }
   0xf   :  { %42 = dma.hbm_to_vmem [thread:$0]  %s783_s1, 512, %s37_s14, [#allocation6], %s635_s16, %s635_s16, %s636_s17  }
  0x10   :  { %s637_s20 = smov [#allocation2]   ;;  %s638_s22 = smov [#allocation7]  }
  0x11   :  { %s27_s21 = sshll.u32 %s637_s20, 4  ;;  %s54_s23 = sshll.u32 %s638_s22, 4  ;;  %s28_s21 = int_to_ptr.vmem [resolvable:$true] %s27_s21  ;;  %s55_s23 = int_to_ptr.vmem [resolvable:$true] %s54_s23 }
  0x12   :  { %s512_s24 = scalar_lea.vmem %s28_s21, 32  ;;  %p517_p6 = scmp.lt.s32.totalorder %s28_s21, %s28_s21 }
  0x13   :  { %p513_p5 = scmp.ne.s32.totalorder %s28_s21, %s512_s24  ;;  %p518_p7 = scmp.lt.s32.totalorder %s512_s24, %s512_s24 }
  0x15   :  { %p519_p8 = por %p518_p7, %p517_p6 }
  0x17   :  { %p520_p9 = pnand %p519_p8, %p513_p5 }
  0x19   :  { %523 = shalt.err (!%p520_p9)
}
  0x1a   :  { %30 = dma.hbm_to_vmem [thread:$0]  %s782_s0, 32, %s28_s21, [#allocation3]  }
  0x1b   :  { %s532_s27 = scalar_lea.vmem %s55_s23, 1024  ;;  %p537_p11 = scmp.lt.s32.totalorder %s55_s23, %s55_s23 }
  0x1c   :  { %p533_p10 = scmp.ne.s32.totalorder %s55_s23, %s532_s27  ;;  %p538_p12 = scmp.lt.s32.totalorder %s532_s27, %s532_s27 }
  0x1e   :  { %p539_p13 = por %p538_p12, %p537_p11 }
  0x20   :  { %p540_p0 = pnand %p539_p13, %p533_p10 }
  0x22   :  { %543 = shalt.err (!%p540_p0)
}
  0x23   :  { %60 = dma.hbm_to_vmem [thread:$0]  %s787_s5, 1024, %s55_s23, [#allocation6], %s635_s16, %s635_s16, %s636_s17  }
  0x24   :  { %624 = dma.done.wait [#allocation3], 32  }
  0x25   :  { %625 = vsyncadd [#allocation3], 4294967264 }
  0x26   :  { %626 = dma.done.wait [#allocation6], 1536  }
  0x27   :  { %627 = vsyncadd [#allocation6], 4294965760  ;;  %v639_v0 = vmov 0.0   ;;  %vm640_vm0 = vmmov 0   ;;  %v76_v1 = vld [vmem:[#allocation5 + $0x18] sm:$0xff]  ;;  %v75_v2 = vld [vmem:[#allocation5 + $0x10] sm:$0xff] }
  0x28   :  { %430 = vmatprep.subr.mxu0 %v639_v0  ;;  %438 = vmatprep.mubr.msk.f32.mxu0 %vm640_vm0, %v639_v0  ;;  %v74_v3 = vld [vmem:[#allocation5 + $0x8] sm:$0xff]  ;;  %v73_v4 = vld [vmem:[#allocation5] sm:$0xff]  ;;  %v72_v5 = vld [vmem:[#allocation2] sm:$0x3]  ;;  %vm84_vm1 = vcmask 261120   ;;  %vm158_vm2 = vcmask 254976  }
  0x29   :  { %441 = vmatprep.subr.mxu1 %v639_v0  ;;  %457 = vmatprep.mubr.msk.f32.mxu1 %vm640_vm0, %v639_v0  ;;  %v410_v6 = vld [vmem:[%s784_s2] ss:$0 sm:$0xff]  ;;  %s641_s29 = smov 96   ;;  %v218_v25 = vld [vmem:[#allocation7 + $0x30] sm:$0xff]  ;;  %v217_v26 = vld [vmem:[#allocation7 + $0x28] sm:$0xff]  ;;  %vm227_vm3 = vcmask 523264  }
  0x2a   :  { %431 = vmatpush3.msra.mxu0 %v76_v1  ;;  %v219_v24 = vld [vmem:[#allocation7 + $0x38] sm:$0xff]  ;;  %v216_v27 = vld [vmem:[#allocation7 + $0x20] sm:$0xff]  ;;  %v214_v29 = vld [vmem:[#allocation7 + $0x10] sm:$0xff] }
  0x2b   :  { %432 = vmatprep.subr.mxu0 %v639_v0  ;;  %442 = vmatpush3.msra.mxu1 %v219_v24  ;;  %v215_v28 = vld [vmem:[#allocation7 + $0x18] sm:$0xff]  ;;  %v213_v30 = vld [vmem:[#allocation7 + $0x8] sm:$0xff]  ;;  %v212_v31 = vld [vmem:[#allocation7] sm:$0xff] }
  0x2c   :  { %433 = vmatpush3.msra.mxu0 %v75_v2  ;;  %443 = vmatprep.subr.mxu1 %v639_v0  ;;  %v412_v42 = vld [vmem:[%s785_s3] ss:$0 sm:$0xff]  ;;  %s642_s3 = smov 32  }
  0x2d   :  { %434 = vmatprep.subr.mxu0 %v639_v0  ;;  %444 = vmatpush3.msra.mxu1 %v218_v25  ;;  %v413_v44 = vld [vmem:[%s786_s4] ss:$0 sm:$0xff]  ;;  %s643_s4 = smov 64  }
  0x2e   :  { %435 = vmatpush3.msra.mxu0 %v74_v3  ;;  %445 = vmatprep.subr.mxu1 %v639_v0  ;;  %v414_v48 = vld [vmem:[%s788_s6] ss:$0 sm:$0xff]  ;;  %s644_s6 = smov [#allocation8]  }
  0x2f   :  { %436 = vmatprep.subr.mxu0 %v639_v0  ;;  %446 = vmatpush3.msra.mxu1 %v217_v26  ;;  %s359_s15 = sshll.u32 %s644_s6, 4  ;;  %s360_s15 = int_to_ptr.vmem [resolvable:$true] %s359_s15 }
  0x30   :  { %437 = vmatpush3.msra.mxu0 %v73_v4  ;;  %447 = vmatprep.subr.mxu1 %v639_v0  ;;  %s544_s16 = scalar_lea.vmem %s360_s15, 32  ;;  %p549_p2 = scmp.lt.s32.totalorder %s360_s15, %s360_s15 }
  0x31   :  { %439 = vmatmul.mubr.msk.f32.vlgmr.msra.gmra.mxu0 %vm84_vm1, %v72_v5  ;;  %448 = vmatpush3.msra.mxu1 %v216_v27  ;;  %p545_p1 = scmp.ne.s32.totalorder %s360_s15, %s544_s16  ;;  %p550_p3 = scmp.lt.s32.totalorder %s544_s16, %s544_s16 }
  0x32   :  { %449 = vmatprep.subr.mxu1 %v639_v0 }
  0x33   :  { %450 = vmatpush3.msra.mxu1 %v215_v28  ;;  %p551_p4 = por %p550_p3, %p549_p2 }
  0x34   :  { %451 = vmatprep.subr.mxu1 %v639_v0 }
  0x35   :  { %452 = vmatpush3.msra.mxu1 %v214_v29  ;;  %p552_p5 = pnand %p551_p4, %p545_p1 }
  0x36   :  { %453 = vmatprep.subr.mxu1 %v639_v0 }
  0x37   :  { %454 = vmatpush3.msra.mxu1 %v213_v30 }
  0x38   :  { %455 = vmatprep.subr.mxu1 %v639_v0 }
  0x39   :  { %456 = vmatpush3.msra.mxu1 %v212_v31 }
  0xf1   :  { %v154_v7 = vpop.f32.mrf.mxu0 }
  0xf2   :  { %v155_v8 = vadd.f32 %v410_v6, %v154_v7 }
  0xf3   :  { %v440_v9 = vpop.f32.mrf.mxu0 }
  0xf4   :  { %174 = vrot.lane.b32.xlu0 %v155_v8, %s641_s29  ;;  %v159_v10 = vsel %vm158_vm2, %v155_v8, 0.0 }
  0xf5   :  { %160 = vadd.xlane.f32.xlu1 %v159_v10 }
 0x166   :  { %v175_v11 = vpop.permute.xlu0 %174 }
 0x167   :  { %v177_v12 = vsel %vm158_vm2, %v175_v11, 0.0 }
 0x168   :  { %178 = vadd.xlane.f32.xlu0 %v177_v12 }
 0x17e   :  { %v161_v17 = vpop.xlane.xlu1 %160 }
 0x17f   :  { %v163_v18 = vmul.f32 0.03125, %v161_v17 }
 0x181   :  { %v164_v19 = vsub.f32 %v155_v8, %v163_v18 }
 0x183   :  { %v165_v20 = vmul.f32 %v164_v19, %v164_v19 }
 0x185   :  { %v166_v21 = vsel %vm158_vm2, %v165_v20, 0.0 }
 0x1f1   :  { %v179_v13 = vpop.xlane.xlu0 %178 }
 0x1f2   :  { %v180_v14 = vmul.f32 0.03125, %v179_v13 }
 0x1f4   :  { %v181_v15 = vsub.f32 %v155_v8, %v180_v14 }
 0x1f6   :  { %v182_v16 = vmul.f32 %v181_v15, %v181_v15 }
 0x1f8   :  { %184 = vrot.lane.b32.xlu1 %v182_v16, %s641_s29 }
 0x21c   :  { %167 = vadd.xlane.f32.xlu1 %v166_v21 }
 0x26a   :  { %v185_v22 = vpop.permute.xlu1 %184 }
 0x26b   :  { %v187_v23 = vsel %vm158_vm2, %v185_v22, 0.0 }
 0x26c   :  { %188 = vadd.xlane.f32.xlu0 %v187_v23 }
 0x2a5   :  { %v168_v32 = vpop.xlane.xlu1 %167 }
 0x2a6   :  { %v169_v33 = vmul.f32 0.03125, %v168_v32 }
 0x2a8   :  { %v170_v34 = vadd.f32 1e-05, %v169_v33 }
 0x2aa   :  { %474 = vrsqrt.f32 %v170_v34 }
 0x2b7   :  { %v475_v38 = vpop.eup %474 }
 0x2b8   :  { %v172_v40 = vmul.f32 %v475_v38, %v164_v19 }
 0x2f5   :  { %v189_v35 = vpop.xlane.xlu0 %188 }
 0x2f6   :  { %v190_v36 = vmul.f32 0.03125, %v189_v35 }
 0x2f8   :  { %v191_v37 = vadd.f32 1e-05, %v190_v36 }
 0x2fa   :  { %476 = vrsqrt.f32 %v191_v37 }
 0x307   :  { %v477_v39 = vpop.eup %476 }
 0x308   :  { %v193_v41 = vmul.f32 %v477_v39, %v181_v15 }
 0x30a   :  { %v194_v43 = vsel %vm84_vm1, %v172_v40, %v193_v41 }
 0x30b   :  { %v202_v45 = vmul.f32 %v412_v42, %v194_v43 }
 0x30d   :  { %v210_v46 = vadd.f32 %v413_v44, %v202_v45 }
 0x30f   :  { %v211_v47 = vmax.f32 %v210_v46, 0.0 }
 0x311   :  { %458 = vmatmul.mubr.msk.f32.vlgmr.msra.gmra.mxu1 %vm227_vm3, %v211_v47 }
 0x3d1   :  { %v297_v49 = vpop.f32.mrf.mxu1 }
 0x3d2   :  { %v747_v50 = vadd.f32 %v414_v48, %v297_v49 }
 0x3d3   :  { %v459_v51 = vpop.f32.mrf.mxu1 }
 0x3d4   :  { %v302_v52 = vmin.f32 %v747_v50, 20.0  ;;  %318 = vst.msk [vmem:[#allocation8] sm:$0x3] %vm158_vm2, %v747_v50  ;;  %325 = vrot.lane.b32.xlu0 %v747_v50, %s642_s3  ;;  %vm301_vm5 = vcmp.gt.f32.partialorder %v747_v50, 20.0 }
 0x3d6   :  { %v303_v53 = vmul.f32 1.442695, %v302_v52 }
 0x3d8   :  { %478 = vpow2.f32 %v303_v53  ;;  %328 = vrot.lane.b32.xlu0 %v747_v50, %s643_s4 }
 0x3e5   :  { %v479_v54 = vpop.eup %478 }
 0x3e6   :  { %v305_v55 = vadd.f32 1.0, %v479_v54  ;;  %v308_v56 = vmul.f32 -0.5, %v479_v54  ;;  %v311_v58 = vand.u32 2147483647, %v479_v54 }
 0x3e8   :  { %480 = vlog2.f32 %v305_v55  ;;  %v309_v57 = vadd.f32 1.0, %v308_v56  ;;  %vm312_vm4 = vcmp.lt.f32.partialorder %v311_v58, 0.0004427343 }
 0x3ea   :  { %v310_v61 = vmul.f32 %v479_v54, %v309_v57 }
 0x3f5   :  { %v481_v59 = vpop.eup %480 }
 0x3f6   :  { %v307_v60 = vmul.f32 0.6931472, %v481_v59 }
 0x3f8   :  { %v313_v62 = vsel %vm312_vm4, %v310_v61, %v307_v60 }
 0x3f9   :  { %v314_v63 = vsel %vm301_vm5, %v747_v50, %v313_v62 }
 0x3fa   :  { %v315_v0 = vadd.f32 1e-06, %v314_v63 }
 0x3fc   :  { %320 = vrot.lane.b32.xlu0 %v315_v0, %s641_s29  ;;  %482 = vrcp.f32 %v315_v0 }
 0x3fd   :  { %555 = shalt.err (!%p552_p5)
}
 0x3fe   :  { %362 = dma.vmem_to_hbm [thread:$0]  %s360_s15, 32, %s789_s7, [#allocation4]  }
 0x3ff   :  { %s645_s19 = smov [#allocation9]  }
 0x400   :  { %s369_s20 = sshll.u32 %s645_s19, 4  ;;  %s370_s20 = int_to_ptr.vmem [resolvable:$true] %s369_s20 }
 0x401   :  { %s564_s21 = scalar_lea.vmem %s370_s20, 32  ;;  %p569_p7 = scmp.lt.s32.totalorder %s370_s20, %s370_s20 }
 0x402   :  { %p565_p6 = scmp.ne.s32.totalorder %s370_s20, %s564_s21  ;;  %p570_p8 = scmp.lt.s32.totalorder %s564_s21, %s564_s21 }
 0x404   :  { %p571_p9 = por %p570_p8, %p569_p7 }
 0x406   :  { %p572_p10 = pnand %p571_p9, %p565_p6 }
 0x409   :  { %v483_v1 = vpop.eup %482 }
 0x40a   :  { %343 = vrot.lane.b32.xlu0 %v483_v1, %s642_s3  ;;  %340 = vrot.lane.b32.xlu1 %v483_v1, %s641_s29 }
 0x40e   :  { %331 = vrot.lane.b32.xlu0 %v747_v50, %s641_s29  ;;  %346 = vrot.lane.b32.xlu1 %v483_v1, %s643_s4 }
 0x446   :  { %v326_v2 = vpop.permute.xlu0 %325 }
 0x44a   :  { %v329_v3 = vpop.permute.xlu0 %328 }
 0x46e   :  { %v321_v4 = vpop.permute.xlu0 %320 }
 0x46f   :  { %323 = vst.msk [vmem:[#allocation9] sm:$0x3] %vm158_vm2, %v321_v4 }
 0x470   :  { %575 = shalt.err (!%p572_p10)
}
 0x471   :  { %372 = dma.vmem_to_hbm [thread:$0]  %s370_s20, 32, %s790_s8, [#allocation10]   ;;  %vm336_vm6 = vcmask 785408   ;;  %v334_v8 = vsel %vm84_vm1, %v747_v50, %v326_v2 }
 0x472   :  { %s646_s23 = smov [#allocation11]   ;;  %s647_s25 = smov [#allocation12]   ;;  %v335_v9 = vsel %vm227_vm3, %v334_v8, %v329_v3 }
 0x473   :  { %s379_s24 = sshll.u32 %s646_s23, 4  ;;  %s389_s26 = sshll.u32 %s647_s25, 4  ;;  %s380_s24 = int_to_ptr.vmem [resolvable:$true] %s379_s24  ;;  %s390_s26 = int_to_ptr.vmem [resolvable:$true] %s389_s26 }
 0x474   :  { %s584_s8 = scalar_lea.vmem %s380_s24, 32  ;;  %p589_p12 = scmp.lt.s32.totalorder %s380_s24, %s380_s24 }
 0x475   :  { %p585_p11 = scmp.ne.s32.totalorder %s380_s24, %s584_s8  ;;  %p590_p13 = scmp.lt.s32.totalorder %s584_s8, %s584_s8 }
 0x477   :  { %p591_p0 = por %p590_p13, %p589_p12 }
 0x479   :  { %p592_p1 = pnand %p591_p0, %p585_p11 }
 0x47c   :  { %v344_v5 = vpop.permute.xlu0 %343  ;;  %v341_v6 = vpop.permute.xlu1 %340 }
 0x47d   :  { %v349_v7 = vsel %vm84_vm1, %v341_v6, %v483_v1 }
 0x47e   :  { %v350_v11 = vsel %vm227_vm3, %v349_v7, %v344_v5 }
 0x480   :  { %v332_v10 = vpop.permute.xlu0 %331  ;;  %v347_v12 = vpop.permute.xlu1 %346 }
 0x481   :  { %v337_v13 = vsel %vm336_vm6, %v335_v9, %v332_v10  ;;  %v351_v14 = vsel %vm336_vm6, %v350_v11, %v347_v12 }
 0x482   :  { %338 = vst [vmem:[#allocation11] sm:$0x3] %v337_v13  ;;  %352 = vst [vmem:[#allocation12] sm:$0x3] %v351_v14 }
 0x483   :  { %595 = shalt.err (!%p592_p1)
}
 0x484   :  { %382 = dma.vmem_to_hbm [thread:$0]  %s380_s24, 32, %s791_s9, [#allocation10]  }
 0x485   :  { %s604_s28 = scalar_lea.vmem %s390_s26, 32  ;;  %p609_p3 = scmp.lt.s32.totalorder %s390_s26, %s390_s26 }
 0x486   :  { %p605_p2 = scmp.ne.s32.totalorder %s390_s26, %s604_s28  ;;  %p610_p4 = scmp.lt.s32.totalorder %s604_s28, %s604_s28 }
 0x488   :  { %p611_p5 = por %p610_p4, %p609_p3 }
 0x48a   :  { %p612_p6 = pnand %p611_p5, %p605_p2 }
 0x48c   :  { %615 = shalt.err (!%p612_p6)
}
 0x48d   :  { %392 = dma.vmem_to_hbm [thread:$0]  %s390_s26, 32, %s792_s10, [#allocation13]  }
 0x48e   :  { %628 = dma.done.wait [#allocation4], 32  }
 0x48f   :  { %629 = vsyncadd [#allocation4], 4294967264 }
 0x490   :  { %630 = dma.done.wait [#allocation10], 64  }
 0x491   :  { %631 = vsyncadd [#allocation10], 4294967232 }
 0x492   :  { %632 = dma.done.wait [#allocation13], 32  }
 0x493   :  { %633 = vsyncadd [#allocation13], 4294967264 }
 0x494   :  { %405 = vsyncpa [#allocation3], 1 }
 0x495   :  { %406 = vsyncpa [#allocation6], 1 }
 0x496   :  { %407 = vsyncpa [#allocation4], 1 }
 0x497   :  { %408 = vsyncpa [#allocation10], 1 }
 0x498   :  { %409 = vsyncpa [#allocation13], 1 }

</bundles_post_ra>
